<compile_context>
chip_gen: v6e
topology: v6e:2x2x1
jax: 0.10.0
libtpu: 0.0.40
codegen_flags: <defaults>
</compile_context>

<pallas_src>
import functools

import jax
import jax.numpy as jnp
from jax.experimental import pallas as pl
from jax.experimental.pallas import tpu as pltpu


LANE = 128
SUBLANE = 8


def _round_up(x, m):
    return ((x + m - 1) // m) * m


# --------------------------- Pallas kernel ----------------------------------
def classifier_kernel(img_ref, txt_ref, w1a_ref, w1b_ref, b1_ref,
                      w2_ref, b2_ref, out_ref):
    # Layer 1: relu(concat([img, txt]) @ W1 + b1), realised as two MXU dots
    # accumulated in f32 (no concat copy, no extra VPU add beyond the bias).
    h = jnp.dot(img_ref[...], w1a_ref[...], preferred_element_type=jnp.float32)
    h += jnp.dot(txt_ref[...], w1b_ref[...], preferred_element_type=jnp.float32)
    h = jnp.maximum(h + b1_ref[...], 0.0)
    # Layer 2: logits = h @ W2 + b2 (cast only the matmul operand to bf16).
    out_ref[...] = (jnp.dot(h.astype(w2_ref.dtype), w2_ref[...],
                            preferred_element_type=jnp.float32)
                    + b2_ref[...]).astype(out_ref.dtype)


# -------------------- one-time weight prep (init, not forward) --------------
def prepare_classifier_params(w1, b1, w2, b2, *, embed_dim, num_classes):
    """Split W1 into image/text halves, zero-pad the contraction dim and the
    class dim to lane multiples, cast matmul operands to bf16. Done once."""
    E = embed_dim
    H = w1.shape[1]
    assert w1.shape[0] == 2 * E and w2.shape == (H, num_classes)
    Ep = _round_up(E, LANE)
    Cp = _round_up(num_classes, LANE)          # 20 -> 128 (not 256)

    w1a = jnp.zeros((Ep, H), jnp.float32).at[:E].set(w1[:E])
    w1b = jnp.zeros((Ep, H), jnp.float32).at[:E].set(w1[E:])
    w2p = jnp.zeros((H, Cp), jnp.float32).at[:, :num_classes].set(w2)
    b2p = jnp.zeros((1, Cp), jnp.float32).at[:, :num_classes].set(b2.reshape(1, -1))

    return {
        "w1a": w1a.astype(jnp.bfloat16),
        "w1b": w1b.astype(jnp.bfloat16),
        "b1": b1.reshape(1, H).astype(jnp.float32),
        "w2": w2p.astype(jnp.bfloat16),
        "b2": b2p,
    }


# ------------------------------ forward head --------------------------------
@functools.partial(jax.jit, static_argnames=("num_classes", "tm_max"))
def classifier_head(img_feat, txt_feat, params, *, num_classes, tm_max=512):
    """Pallas forward of
    nn.Sequential(Linear(2E, 512), ReLU(), Linear(512, num_classes))
    applied to concat([img_feat, txt_feat], dim=1)."""
    B, E = img_feat.shape
    w1a, w1b = params["w1a"], params["w1b"]
    b1, w2, b2 = params["b1"], params["w2"], params["b2"]
    Ep, H = w1a.shape
    Cp = w2.shape[1]

    # Per-call activation prep (fused by jit): bf16 cast + zero-pad K to Ep.
    img = img_feat.astype(jnp.bfloat16)
    txt = txt_feat.astype(jnp.bfloat16)
    if Ep != E:
        img = jnp.pad(img, ((0, 0), (0, Ep - E)))
        txt = jnp.pad(txt, ((0, 0), (0, Ep - E)))

    # Batch tiling: pad to a sublane multiple; large batches tiled by tm rows.
    if B <= tm_max:
        Bp = _round_up(B, SUBLANE)
        tm = Bp
    else:
        tm = tm_max                               # multiple of 8
        Bp = _round_up(B, tm)
    if Bp != B:
        img = jnp.pad(img, ((0, Bp - B), (0, 0)))
        txt = jnp.pad(txt, ((0, Bp - B), (0, 0)))
    n_tiles = Bp // tm

    cost = pl.CostEstimate(
        flops=2 * Bp * (2 * Ep) * H + 2 * Bp * H * Cp,
        transcendentals=0,
        bytes_accessed=(2 * Bp * Ep * 2 + 2 * Ep * H * 2 + H * 4
                        + H * Cp * 2 + Cp * 4 + Bp * Cp * 4),
    )

    if n_tiles == 1:
        # Tiny-shape path: one block, no grid, no pipeline bookkeeping.
        out = pl.pallas_call(
            classifier_kernel,
            out_shape=jax.ShapeDtypeStruct((Bp, Cp), jnp.float32),
            cost_estimate=cost,
        )(img, txt, w1a, w1b, b1, w2, b2)
    else:
        # Production path: batch-tiled; weights/biases single-buffered and
        # VMEM-resident (constant index_map) across grid steps.
        # Working set at tm=512, Ep<=512, Cp=128 is only a few MiB, well under
        # the 32 MiB scoped VMEM default on v6e/v7x.
        def const_spec(shape):
            return pl.BlockSpec(shape, lambda i: (0,) * len(shape),
                                pipeline_mode=pl.Buffered(buffer_count=1))

        out = pl.pallas_call(
            classifier_kernel,
            out_shape=jax.ShapeDtypeStruct((Bp, Cp), jnp.float32),
            grid=(n_tiles,),
            in_specs=[
                pl.BlockSpec((tm, Ep), lambda i: (i, 0)),
                pl.BlockSpec((tm, Ep), lambda i: (i, 0)),
                const_spec((Ep, H)),
                const_spec((Ep, H)),
                const_spec((1, H)),
                const_spec((H, Cp)),
                const_spec((1, Cp)),
            ],
            out_specs=pl.BlockSpec((tm, Cp), lambda i: (i, 0)),
            compiler_params=pltpu.CompilerParams(
                dimension_semantics=("parallel",)),   # both TCs on v7x
            cost_estimate=cost,
        )(img, txt, w1a, w1b, b1, w2, b2)

    # Sliced under jit -> fuses with the consumer; nothing downstream ever
    # reads the padded (Bp, Cp) buffer.
    return out[:B, :num_classes]


# ----------------- deterministic parameter init (PyTorch-Linear-like) -------
def linear_init(key, fan_in, fan_out):
    kw, kb = jax.random.split(key)
    bound = 1.0 / jnp.sqrt(fan_in)
    w = jax.random.uniform(kw, (fan_in, fan_out), jnp.float32, -bound, bound)
    b = jax.random.uniform(kb, (fan_out,), jnp.float32, -bound, bound)
    return w, b


# ----------------- stub CLIP encoders (plain JAX glue) ----------------------
def encode_image(image, w_img):
    # image: (B, 3, H, W) NCHW -> flatten -> linear projection to embed_dim
    B = image.shape[0]
    return image.reshape(B, -1) @ w_img                       # (B, E)


def encode_text(tokens, emb_table, w_txt):
    # tokens: (B, S) int32 -> embedding lookup -> mean pool -> linear proj
    emb = emb_table[tokens]                                    # (B, S, E)
    return emb.mean(axis=1) @ w_txt                            # (B, E)


# ----------------------------- references -----------------------------------
def reference_head_bf16(img_feat, txt_feat, w1, b1, w2, b2):
    """Same arithmetic as the kernel (bf16 matmul operands, f32 accumulate)."""
    fused = jnp.concatenate([img_feat, txt_feat], axis=1).astype(jnp.bfloat16)
    h = jnp.dot(fused, w1.astype(jnp.bfloat16),
                preferred_element_type=jnp.float32) + b1
    h = jnp.maximum(h, 0.0)
    return jnp.dot(h.astype(jnp.bfloat16), w2.astype(jnp.bfloat16),
                   preferred_element_type=jnp.float32) + b2


def reference_head_f32(img_feat, txt_feat, w1, b1, w2, b2):
    """Pure-f32 module semantics."""
    fused = jnp.concatenate([img_feat, txt_feat], axis=1)
    return jnp.maximum(fused @ w1 + b1, 0.0) @ w2 + b2


if __name__ == "__main__":
    key = jax.random.PRNGKey(0)
    (k_img, k_txt, k_we, k_wi, k_wt, k_l1, k_l2,
     k_big1, k_big2) = jax.random.split(key, 9)

    # small shapes consistent with the module
    B = 2
    embed_dim = 32          # clip_model.visual.output_dim (small synthetic)
    num_classes = 20
    hidden = 512
    C_in, H_img, W_img = 3, 16, 16
    seq, vocab = 8, 64

    # inputs to the module's forward(image, text)
    image = jax.random.normal(k_img, (B, C_in, H_img, W_img), jnp.float32)
    text = jax.random.randint(k_txt, (B, seq), 0, vocab, jnp.int32)

    # stub-encoder params (stand-ins for the frozen CLIP model)
    emb_table = jax.random.normal(k_we, (vocab, embed_dim), jnp.float32) * 0.02
    w_img_proj = jax.random.normal(
        k_wi, (C_in * H_img * W_img, embed_dim), jnp.float32) * 0.02
    w_txt_proj = jax.random.normal(
        k_wt, (embed_dim, embed_dim), jnp.float32) * 0.02

    # classifier params: Linear(2E -> 512), Linear(512 -> num_classes)
    w1, b1 = linear_init(k_l1, 2 * embed_dim, hidden)
    w2, b2 = linear_init(k_l2, hidden, num_classes)

    # one-time weight prep (hoisted out of the forward path)
    params = prepare_classifier_params(w1, b1, w2, b2,
                                       embed_dim=embed_dim,
                                       num_classes=num_classes)

    # ---- forward (B=2 demo; single-block path) ------------------------------
    img_feat = encode_image(image, w_img_proj)                 # (B, E)
    txt_feat = encode_text(text, emb_table, w_txt_proj)        # (B, E)

    logits = classifier_head(img_feat, txt_feat, params,
                             num_classes=num_classes)
    logits = jax.block_until_ready(logits)
    assert logits.shape == (B, num_classes)

    # tight check vs same bf16-operand / f32-accumulate arithmetic
    ref_bf = reference_head_bf16(img_feat, txt_feat, w1, b1, w2, b2)
    assert jnp.allclose(logits, ref_bf, atol=1e-3, rtol=1e-3)

    # loose check vs pure-f32 module semantics (intentional bf16 tradeoff)
    ref_f32 = reference_head_f32(img_feat, txt_feat, w1, b1, w2, b2)
    assert jnp.allclose(logits, ref_f32, atol=2e-2, rtol=2e-2)

    # ---- batch-tiled grid path (tm=512 tiles, batch padding, single-buffered
    #      weights, "parallel" batch axis) ------------------------------------
    B_big = 1000                                               # -> Bp=1024, 2 tiles
    img_big = jax.random.normal(k_big1, (B_big, embed_dim), jnp.float32)
    txt_big = jax.random.normal(k_big2, (B_big, embed_dim), jnp.float32)
    logits_big = classifier_head(img_big, txt_big, params,
                                 num_classes=num_classes)
    logits_big = jax.block_until_ready(logits_big)
    assert logits_big.shape == (B_big, num_classes)
    ref_big = reference_head_bf16(img_big, txt_big, w1, b1, w2, b2)
    assert jnp.allclose(logits_big, ref_big, atol=2e-3, rtol=2e-3)

    print("KERNEL_OK")
</pallas_src>

<mosaic_0001>
module attributes {stable_mosaic.version = 11 : i64} {
  func.func @classifier_kernel(%arg0: memref<8x128xbf16, #tpu.memory_space<vmem>>, %arg1: memref<8x128xbf16, #tpu.memory_space<vmem>>, %arg2: memref<128x512xbf16, #tpu.memory_space<vmem>>, %arg3: memref<128x512xbf16, #tpu.memory_space<vmem>>, %arg4: memref<1x512xf32, #tpu.memory_space<vmem>>, %arg5: memref<512x128xbf16, #tpu.memory_space<vmem>>, %arg6: memref<1x128xf32, #tpu.memory_space<vmem>>, %arg7: memref<8x128xf32, #tpu.memory_space<vmem>>) attributes {dimension_semantics = [], scalar_prefetch = 0 : i64, scratch_operands = 0 : i64, tpu.core_type = #tpu.core_type<tc>} {
    %c0 = arith.constant 0 : index
    %c0_0 = arith.constant 0 : index
    %0 = vector.load %arg0[%c0, %c0_0] : memref<8x128xbf16, #tpu.memory_space<vmem>>, vector<8x128xbf16>
    %c0_1 = arith.constant 0 : index
    %c0_2 = arith.constant 0 : index
    %1 = vector.load %arg2[%c0_1, %c0_2] : memref<128x512xbf16, #tpu.memory_space<vmem>>, vector<128x512xbf16>
    %cst = arith.constant dense<0.000000e+00> : vector<8x512xf32>
    %2 = tpu.matmul %0, %1, %cst {dimension_numbers = #tpu.dot_dimension_numbers<[1], [0], [0], [1], [0, 0, 1, 1], [], []>} : vector<8x128xbf16>, vector<128x512xbf16>, vector<8x512xf32> -> vector<8x512xf32>
    %c0_3 = arith.constant 0 : index
    %c0_4 = arith.constant 0 : index
    %3 = vector.load %arg1[%c0_3, %c0_4] : memref<8x128xbf16, #tpu.memory_space<vmem>>, vector<8x128xbf16>
    %c0_5 = arith.constant 0 : index
    %c0_6 = arith.constant 0 : index
    %4 = vector.load %arg3[%c0_5, %c0_6] : memref<128x512xbf16, #tpu.memory_space<vmem>>, vector<128x512xbf16>
    %cst_7 = arith.constant dense<0.000000e+00> : vector<8x512xf32>
    %5 = tpu.matmul %3, %4, %cst_7 {dimension_numbers = #tpu.dot_dimension_numbers<[1], [0], [0], [1], [0, 0, 1, 1], [], []>} : vector<8x128xbf16>, vector<128x512xbf16>, vector<8x512xf32> -> vector<8x512xf32>
    %6 = arith.addf %2, %5 : vector<8x512xf32>
    %c0_8 = arith.constant 0 : index
    %c0_9 = arith.constant 0 : index
    %7 = vector.load %arg4[%c0_8, %c0_9] : memref<1x512xf32, #tpu.memory_space<vmem>>, vector<1x512xf32>
    %8 = vector.broadcast %7 : vector<1x512xf32> to vector<8x512xf32>
    %9 = arith.addf %6, %8 : vector<8x512xf32>
    %cst_10 = arith.constant 0.000000e+00 : f32
    %10 = vector.broadcast %cst_10 : f32 to vector<8x512xf32>
    %11 = arith.maximumf %9, %10 : vector<8x512xf32>
    %12 = arith.truncf %11 : vector<8x512xf32> to vector<8x512xbf16>
    %c0_11 = arith.constant 0 : index
    %c0_12 = arith.constant 0 : index
    %13 = vector.load %arg5[%c0_11, %c0_12] : memref<512x128xbf16, #tpu.memory_space<vmem>>, vector<512x128xbf16>
    %cst_13 = arith.constant dense<0.000000e+00> : vector<8x128xf32>
    %14 = tpu.matmul %12, %13, %cst_13 {dimension_numbers = #tpu.dot_dimension_numbers<[1], [0], [0], [1], [0, 0, 1, 1], [], []>} : vector<8x512xbf16>, vector<512x128xbf16>, vector<8x128xf32> -> vector<8x128xf32>
    %c0_14 = arith.constant 0 : index
    %c0_15 = arith.constant 0 : index
    %15 = vector.load %arg6[%c0_14, %c0_15] : memref<1x128xf32, #tpu.memory_space<vmem>>, vector<1x128xf32>
    %16 = vector.broadcast %15 : vector<1x128xf32> to vector<8x128xf32>
    %17 = arith.addf %14, %16 : vector<8x128xf32>
    %c0_16 = arith.constant 0 : index
    %c0_17 = arith.constant 0 : index
    %18 = vector.load %arg7[%c0_16, %c0_17] : memref<8x128xf32, #tpu.memory_space<vmem>>, vector<8x128xf32>
    tpu.vector_store %arg7[%c0_16, %c0_17], %17 {strides = array<i32>} : memref<8x128xf32, #tpu.memory_space<vmem>>, vector<8x128xf32>,
    return
  }
}

</mosaic_0001>

<bundles_post_ra>
// kernel: classifier_head.1
= control target key start
LH: loop header
LB: loop body
LE: loop exit
PB: predicated region body
PF: predicated region fallthrough
CT: control target
= control target key end

     0   :  { %12 = vsyncpa [#allocation3], 0  ;;  %s1419_s0 = inlined_call_operand.vmem [shape: bf16[8,128], index: 0, kind: input, shape index: {}]   ;;  %s1420_s1 = inlined_call_operand.vmem [shape: bf16[8,128], index: 1, kind: input, shape index: {}]   ;;  %s1421_s2 = inlined_call_operand.hbm [shape: bf16[128,512], index: 2, kind: input, shape index: {}]   ;;  %s1422_s3 = inlined_call_operand.hbm [shape: bf16[128,512], index: 3, kind: input, shape index: {}]   ;;  %s1423_s4 = inlined_call_operand.vmem [shape: f32[1,512], index: 4, kind: input, shape index: {}]   ;;  %s1424_s5 = inlined_call_operand.hbm [shape: bf16[512,128], index: 5, kind: input, shape index: {}]   ;;  %s1425_s6 = inlined_call_operand.vmem [shape: f32[1,128], index: 6, kind: input, shape index: {}]   ;;  %s1426_s7 = inlined_call_operand.vmem [shape: f32[8,128], index: 7, kind: output, shape index: {}]  }
   0x1   :  { %13 = vsyncpa [#allocation5], 0  ;;  %s1343_s24 = smov [#allocation4]   ;;  %s1344_s26 = smov [#allocation2]  }
   0x2   :  { %s35_s25 = sshll.u32 %s1343_s24, 4  ;;  %s23_s27 = sshll.u32 %s1344_s26, 4  ;;  %s36_s25 = int_to_ptr.vmem [resolvable:$true] %s35_s25  ;;  %s24_s27 = int_to_ptr.vmem [resolvable:$true] %s23_s27 }
   0x3   :  { %s1287_s28 = scalar_lea.vmem %s36_s25, 4096  ;;  %p1292_p1 = scmp.lt.s32.totalorder %s36_s25, %s36_s25 }
   0x4   :  { %p1288_p0 = scmp.ne.s32.totalorder %s36_s25, %s1287_s28  ;;  %p1293_p2 = scmp.lt.s32.totalorder %s1287_s28, %s1287_s28 }
   0x6   :  { %p1294_p3 = por %p1293_p2, %p1292_p1 }
   0x8   :  { %p1295_p4 = pnand %p1294_p3, %p1288_p0 }
   0xa   :  { %1298 = shalt.err (!%p1295_p4)
}
   0xb   :  { %s1345_s29 = smov 256   ;;  %s1346_s30 = smov 16  }
   0xc   :  { %41 = dma.hbm_to_vmem [thread:$0]  %s1422_s3, 4096, %s36_s25, [#allocation5], %s1345_s29, %s1345_s29, %s1346_s30  }
   0xd   :  { %s1307_s10 = scalar_lea.vmem %s24_s27, 4096  ;;  %p1312_p6 = scmp.lt.s32.totalorder %s24_s27, %s24_s27 }
   0xe   :  { %p1308_p5 = scmp.ne.s32.totalorder %s24_s27, %s1307_s10  ;;  %p1313_p7 = scmp.lt.s32.totalorder %s1307_s10, %s1307_s10 }
  0x10   :  { %p1314_p8 = por %p1313_p7, %p1312_p6 }
  0x12   :  { %p1315_p9 = pnand %p1314_p8, %p1308_p5 }
  0x14   :  { %1318 = shalt.err (!%p1315_p9)
}
  0x15   :  { %29 = dma.hbm_to_vmem [thread:$0]  %s1421_s2, 4096, %s24_s27, [#allocation3], %s1345_s29, %s1345_s29, %s1346_s30  }
  0x16   :  { %s1347_s13 = smov [#allocation6]  }
  0x17   :  { %s49_s14 = sshll.u32 %s1347_s13, 4  ;;  %s50_s14 = int_to_ptr.vmem [resolvable:$true] %s49_s14 }
  0x18   :  { %s1327_s15 = scalar_lea.vmem %s50_s14, 4096  ;;  %p1332_p11 = scmp.lt.s32.totalorder %s50_s14, %s50_s14 }
  0x19   :  { %p1328_p10 = scmp.ne.s32.totalorder %s50_s14, %s1327_s15  ;;  %p1333_p12 = scmp.lt.s32.totalorder %s1327_s15, %s1327_s15 }
  0x1b   :  { %p1334_p13 = por %p1333_p12, %p1332_p11 }
  0x1d   :  { %p1335_p0 = pnand %p1334_p13, %p1328_p10 }
  0x1f   :  { %1338 = shalt.err (!%p1335_p0)
}
  0x20   :  { %s1348_s3 = smov 64   ;;  %s1349_s16 = smov 4  }
  0x21   :  { %55 = dma.hbm_to_vmem [thread:$0]  %s1424_s5, 4096, %s50_s14, [#allocation5], %s1348_s3, %s1348_s3, %s1349_s16  }
  0x22   :  { %1339 = dma.done.wait [#allocation3], 4096  }
  0x23   :  { %1340 = vsyncadd [#allocation3], 4294963200 }
  0x24   :  { %1341 = dma.done.wait [#allocation5], 8192  }
  0x25   :  { %1342 = vsyncadd [#allocation5], 4294959104  ;;  %v1350_v0 = vmov 0   ;;  %v1151_v1 = vld [vmem:[#allocation4 + $0xe4] ss:$16 sps:$4 sm:$0xff]  }
  0x26   :  { %326 = vmatprep.mubr.bf16.mxu0 %v1350_v0  ;;  %367 = vmatprep.mubr.bf16.mxu1 %v1350_v0  ;;  %v1153_v2 = vld [vmem:[#allocation4 + $0xec] ss:$16 sps:$4 sm:$0xff]   ;;  %v1155_v3 = vld [vmem:[#allocation4 + $0xe0] ss:$16 sps:$4 sm:$0xff]   ;;  %v1156_v4 = vld [vmem:[#allocation4 + $0xe8] ss:$16 sps:$4 sm:$0xff]  }
  0x27   :  { %294 = vmatprep.subr.bf16.mxu0 %v1151_v1  ;;  %335 = vmatprep.subr.bf16.mxu1 %v1153_v2  ;;  %v1157_v5 = vld [vmem:[#allocation4 + $0xc4] ss:$16 sps:$4 sm:$0xff]   ;;  %v1159_v6 = vld [vmem:[#allocation4 + $0xcc] ss:$16 sps:$4 sm:$0xff]   ;;  %v1161_v7 = vld [vmem:[#allocation4 + $0xc0] ss:$16 sps:$4 sm:$0xff]  }
  0x28   :  { %295 = vmatpush1.bf16.msra.mxu0 %v1155_v3  ;;  %336 = vmatpush1.bf16.msra.mxu1 %v1156_v4  ;;  %v1162_v8 = vld [vmem:[#allocation4 + $0xc8] ss:$16 sps:$4 sm:$0xff]   ;;  %v1163_v9 = vld [vmem:[#allocation4 + $0xa4] ss:$16 sps:$4 sm:$0xff]   ;;  %v1165_v10 = vld [vmem:[#allocation4 + $0xac] ss:$16 sps:$4 sm:$0xff]  }
  0x29   :  { %296 = vmatprep.subr.bf16.mxu0 %v1157_v5  ;;  %337 = vmatprep.subr.bf16.mxu1 %v1159_v6  ;;  %v1167_v11 = vld [vmem:[#allocation4 + $0xa0] ss:$16 sps:$4 sm:$0xff]   ;;  %v1168_v12 = vld [vmem:[#allocation4 + $0xa8] ss:$16 sps:$4 sm:$0xff]   ;;  %v1169_v13 = vld [vmem:[#allocation4 + $0x84] ss:$16 sps:$4 sm:$0xff]  }
  0x2a   :  { %v1171_v14 = vld [vmem:[#allocation4 + $0x8c] ss:$16 sps:$4 sm:$0xff]   ;;  %v1173_v15 = vld [vmem:[#allocation4 + $0x80] ss:$16 sps:$4 sm:$0xff]   ;;  %v1174_v16 = vld [vmem:[#allocation4 + $0x88] ss:$16 sps:$4 sm:$0xff]  }
  0x2b   :  { %v1175_v17 = vld [vmem:[#allocation4 + $0x64] ss:$16 sps:$4 sm:$0xff]   ;;  %v1177_v18 = vld [vmem:[#allocation4 + $0x6c] ss:$16 sps:$4 sm:$0xff]   ;;  %v1179_v19 = vld [vmem:[#allocation4 + $0x60] ss:$16 sps:$4 sm:$0xff]  }
  0x2c   :  { %297 = vmatpush1.bf16.msra.mxu0 %v1161_v7  ;;  %338 = vmatpush1.bf16.msra.mxu1 %v1162_v8  ;;  %v1180_v20 = vld [vmem:[#allocation4 + $0x68] ss:$16 sps:$4 sm:$0xff]   ;;  %v1181_v21 = vld [vmem:[#allocation4 + $0x44] ss:$16 sps:$4 sm:$0xff]   ;;  %v1183_v22 = vld [vmem:[#allocation4 + $0x4c] ss:$16 sps:$4 sm:$0xff]  }
  0x2d   :  { %298 = vmatprep.subr.bf16.mxu0 %v1163_v9  ;;  %339 = vmatprep.subr.bf16.mxu1 %v1165_v10  ;;  %v1185_v23 = vld [vmem:[#allocation4 + $0x40] ss:$16 sps:$4 sm:$0xff]   ;;  %v1186_v24 = vld [vmem:[#allocation4 + $0x48] ss:$16 sps:$4 sm:$0xff]   ;;  %v1187_v25 = vld [vmem:[#allocation4 + $0x24] ss:$16 sps:$4 sm:$0xff]  }
  0x2e   :  { %v1189_v26 = vld [vmem:[#allocation4 + $0x2c] ss:$16 sps:$4 sm:$0xff]   ;;  %v1191_v27 = vld [vmem:[#allocation4 + $0x20] ss:$16 sps:$4 sm:$0xff]   ;;  %v1192_v28 = vld [vmem:[#allocation4 + $0x28] ss:$16 sps:$4 sm:$0xff]  }
  0x2f   :  { %v1193_v29 = vld [vmem:[#allocation4 + $0x4] ss:$16 sps:$4 sm:$0xff]   ;;  %v1195_v30 = vld [vmem:[#allocation4 + $0xc] ss:$16 sps:$4 sm:$0xff]   ;;  %v1197_v31 = vld [vmem:[#allocation4] ss:$16 sps:$4 sm:$0xff]  }
  0x30   :  { %299 = vmatpush1.bf16.msra.mxu0 %v1167_v11  ;;  %340 = vmatpush1.bf16.msra.mxu1 %v1168_v12  ;;  %v1198_v32 = vld [vmem:[#allocation4 + $0x8] ss:$16 sps:$4 sm:$0xff]   ;;  %v1201_v33 = vld [vmem:[#allocation2 + $0xe4] ss:$16 sps:$4 sm:$0xff]   ;;  %v1204_v34 = vld [vmem:[#allocation2 + $0xec] ss:$16 sps:$4 sm:$0xff]  }
  0x31   :  { %300 = vmatprep.subr.bf16.mxu0 %v1169_v13  ;;  %341 = vmatprep.subr.bf16.mxu1 %v1171_v14  ;;  %v101_v35 = vld [vmem:[%s1420_s1] sm:$0xf]  ;;  %v1202_v37 = vld [vmem:[#allocation2 + $0xe8] ss:$16 sps:$4 sm:$0xff]   ;;  %v1207_v38 = vld [vmem:[#allocation2 + $0xc4] ss:$16 sps:$4 sm:$0xff]  }
  0x32   :  { %v1199_v36 = vld [vmem:[#allocation2 + $0xe0] ss:$16 sps:$4 sm:$0xff]   ;;  %v1210_v39 = vld [vmem:[#allocation2 + $0xcc] ss:$16 sps:$4 sm:$0xff]   ;;  %v1208_v41 = vld [vmem:[#allocation2 + $0xc8] ss:$16 sps:$4 sm:$0xff]  }
  0x33   :  { %v1205_v40 = vld [vmem:[#allocation2 + $0xc0] ss:$16 sps:$4 sm:$0xff]   ;;  %v1213_v42 = vld [vmem:[#allocation2 + $0xa4] ss:$16 sps:$4 sm:$0xff]   ;;  %v1216_v43 = vld [vmem:[#allocation2 + $0xac] ss:$16 sps:$4 sm:$0xff]  }
  0x34   :  { %301 = vmatpush1.bf16.msra.mxu0 %v1173_v15  ;;  %342 = vmatpush1.bf16.msra.mxu1 %v1174_v16  ;;  %v1211_v44 = vld [vmem:[#allocation2 + $0xa0] ss:$16 sps:$4 sm:$0xff]   ;;  %v1214_v45 = vld [vmem:[#allocation2 + $0xa8] ss:$16 sps:$4 sm:$0xff]   ;;  %v1219_v46 = vld [vmem:[#allocation2 + $0x84] ss:$16 sps:$4 sm:$0xff]  }
  0x35   :  { %302 = vmatprep.subr.bf16.mxu0 %v1175_v17  ;;  %343 = vmatprep.subr.bf16.mxu1 %v1177_v18  ;;  %v1222_v47 = vld [vmem:[#allocation2 + $0x8c] ss:$16 sps:$4 sm:$0xff]   ;;  %v1217_v48 = vld [vmem:[#allocation2 + $0x80] ss:$16 sps:$4 sm:$0xff]   ;;  %v1220_v49 = vld [vmem:[#allocation2 + $0x88] ss:$16 sps:$4 sm:$0xff]  }
  0x36   :  { %v1225_v50 = vld [vmem:[#allocation2 + $0x64] ss:$16 sps:$4 sm:$0xff]   ;;  %v1228_v51 = vld [vmem:[#allocation2 + $0x6c] ss:$16 sps:$4 sm:$0xff]   ;;  %v1223_v52 = vld [vmem:[#allocation2 + $0x60] ss:$16 sps:$4 sm:$0xff]  }
  0x37   :  { %v1226_v53 = vld [vmem:[#allocation2 + $0x68] ss:$16 sps:$4 sm:$0xff]   ;;  %v1231_v54 = vld [vmem:[#allocation2 + $0x44] ss:$16 sps:$4 sm:$0xff]   ;;  %v1234_v55 = vld [vmem:[#allocation2 + $0x4c] ss:$16 sps:$4 sm:$0xff]  }
  0x38   :  { %303 = vmatpush1.bf16.msra.mxu0 %v1179_v19  ;;  %344 = vmatpush1.bf16.msra.mxu1 %v1180_v20  ;;  %v1229_v56 = vld [vmem:[#allocation2 + $0x40] ss:$16 sps:$4 sm:$0xff]   ;;  %v1232_v57 = vld [vmem:[#allocation2 + $0x48] ss:$16 sps:$4 sm:$0xff]   ;;  %v1237_v58 = vld [vmem:[#allocation2 + $0x24] ss:$16 sps:$4 sm:$0xff]  }
  0x39   :  { %304 = vmatprep.subr.bf16.mxu0 %v1181_v21  ;;  %345 = vmatprep.subr.bf16.mxu1 %v1183_v22  ;;  %v1240_v59 = vld [vmem:[#allocation2 + $0x2c] ss:$16 sps:$4 sm:$0xff]   ;;  %v1235_v60 = vld [vmem:[#allocation2 + $0x20] ss:$16 sps:$4 sm:$0xff]   ;;  %v1238_v61 = vld [vmem:[#allocation2 + $0x28] ss:$16 sps:$4 sm:$0xff]  }
  0x3a   :  { %v1243_v62 = vld [vmem:[#allocation2 + $0x4] ss:$16 sps:$4 sm:$0xff]   ;;  %v1246_v63 = vld [vmem:[#allocation2 + $0xc] ss:$16 sps:$4 sm:$0xff]   ;;  %v1244_v1 = vld [vmem:[#allocation2 + $0x8] ss:$16 sps:$4 sm:$0xff]  }
  0x3b   :  { %v68_v2 = vld [vmem:[%s1419_s0] sm:$0xf]  ;;  %v1247_v3 = vld [vmem:[#allocation6 + $0x78] sm:$0xff]   ;;  %v1251_v7 = vld [vmem:[#allocation6 + $0x70] sm:$0xff]  }
  0x3c   :  { %305 = vmatpush1.bf16.msra.mxu0 %v1185_v23  ;;  %346 = vmatpush1.bf16.msra.mxu1 %v1186_v24  ;;  %v1248_v4 = vld [vmem:[#allocation6 + $0xf8] sm:$0xff]   ;;  %v1252_v8 = vld [vmem:[#allocation6 + $0xf0] sm:$0xff]   ;;  %v1255_v11 = vld [vmem:[#allocation6 + $0x68] sm:$0xff]  }
  0x3d   :  { %306 = vmatprep.subr.bf16.mxu0 %v1187_v25  ;;  %347 = vmatprep.subr.bf16.mxu1 %v1189_v26  ;;  %v1249_v5 = vld [vmem:[#allocation6 + $0x38] sm:$0xff]   ;;  %v1253_v9 = vld [vmem:[#allocation6 + $0x30] sm:$0xff]   ;;  %v1256_v12 = vld [vmem:[#allocation6 + $0xe8] sm:$0xff]  }
  0x3e   :  { %v1250_v6 = vld [vmem:[#allocation6 + $0xb8] sm:$0xff]   ;;  %v1254_v10 = vld [vmem:[#allocation6 + $0xb0] sm:$0xff]   ;;  %v1257_v13 = vld [vmem:[#allocation6 + $0x28] sm:$0xff]  }
  0x3f   :  { %v1258_v14 = vld [vmem:[#allocation6 + $0xa8] sm:$0xff]   ;;  %v1259_v15 = vld [vmem:[#allocation6 + $0x60] sm:$0xff]   ;;  %v1263_v19 = vld [vmem:[#allocation6 + $0x58] sm:$0xff]  }
  0x40   :  { %307 = vmatpush1.bf16.msra.mxu0 %v1191_v27  ;;  %348 = vmatpush1.bf16.msra.mxu1 %v1192_v28  ;;  %v1260_v16 = vld [vmem:[#allocation6 + $0xe0] sm:$0xff]   ;;  %v1264_v20 = vld [vmem:[#allocation6 + $0xd8] sm:$0xff]   ;;  %v1267_v23 = vld [vmem:[#allocation6 + $0x50] sm:$0xff]  }
  0x41   :  { %308 = vmatprep.subr.bf16.mxu0 %v1193_v29  ;;  %349 = vmatprep.subr.bf16.mxu1 %v1195_v30  ;;  %v1261_v17 = vld [vmem:[#allocation6 + $0x20] sm:$0xff]   ;;  %v1265_v21 = vld [vmem:[#allocation6 + $0x18] sm:$0xff]   ;;  %v1268_v24 = vld [vmem:[#allocation6 + $0xd0] sm:$0xff]  }
  0x42   :  { %v1262_v18 = vld [vmem:[#allocation6 + $0xa0] sm:$0xff]   ;;  %v1266_v22 = vld [vmem:[#allocation6 + $0x98] sm:$0xff]   ;;  %v1269_v25 = vld [vmem:[#allocation6 + $0x10] sm:$0xff]  }
  0x43   :  { %v1270_v26 = vld [vmem:[#allocation6 + $0x90] sm:$0xff]   ;;  %v1271_v27 = vld [vmem:[#allocation6 + $0x48] sm:$0xff]  }
  0x44   :  { %309 = vmatpush1.bf16.msra.mxu0 %v1197_v31  ;;  %350 = vmatpush1.bf16.msra.mxu1 %v1198_v32  ;;  %v1272_v28 = vld [vmem:[#allocation6 + $0xc8] sm:$0xff]   ;;  %v1275_v31 = vld [vmem:[#allocation6 + $0x40] sm:$0xff]  }
  0x45   :  { %536 = vmatprep.subr.bf16.mxu0 %v1201_v33  ;;  %577 = vmatprep.subr.bf16.mxu1 %v1204_v34  ;;  %v1273_v29 = vld [vmem:[#allocation6 + $0x8] sm:$0xff]   ;;  %v1276_v32 = vld [vmem:[#allocation6 + $0xc0] sm:$0xff]  }
  0x46   :  { %v1274_v30 = vld [vmem:[#allocation6 + $0x88] sm:$0xff]   ;;  %v1277_v33 = vld [vmem:[#allocation6] sm:$0xff]  }
  0x47   :  { %327 = vmatmul.mubr.bf16.vlgmr.msra.gmra.mxu0 %v101_v35  ;;  %368 = vmatmul.mubr.bf16.vlgmr.msra.gmra.mxu1 %v101_v35  ;;  %v1278_v34 = vld [vmem:[#allocation6 + $0x80] sm:$0xff]  }
  0x48   :  { %537 = vmatpush1.bf16.msra.mxu0 %v1199_v36  ;;  %578 = vmatpush1.bf16.msra.mxu1 %v1202_v37 }
  0x49   :  { %538 = vmatprep.subr.bf16.mxu0 %v1207_v38  ;;  %579 = vmatprep.subr.bf16.mxu1 %v1210_v39 }
  0x4a   :  { %568 = vmatprep.mubr.bf16.mxu0 %v1350_v0  ;;  %609 = vmatprep.mubr.bf16.mxu1 %v1350_v0  ;;  %v1241_v0 = vld [vmem:[#allocation2] ss:$16 sps:$4 sm:$0xff]  }
  0x4c   :  { %539 = vmatpush1.bf16.msra.mxu0 %v1205_v40  ;;  %580 = vmatpush1.bf16.msra.mxu1 %v1208_v41 }
  0x4d   :  { %540 = vmatprep.subr.bf16.mxu0 %v1213_v42  ;;  %581 = vmatprep.subr.bf16.mxu1 %v1216_v43  ;;  %v620_v43 = vlaneseq }
  0x50   :  { %541 = vmatpush1.bf16.msra.mxu0 %v1211_v44  ;;  %582 = vmatpush1.bf16.msra.mxu1 %v1214_v45  ;;  %v621_v44 = vshrl.u32 %v620_v43, 7 }
  0x51   :  { %542 = vmatprep.subr.bf16.mxu0 %v1219_v46  ;;  %583 = vmatprep.subr.bf16.mxu1 %v1222_v47  ;;  %v618_v47 = vld [vmem:[%s1423_s4] sm:$0xf] }
  0x52   :  { %v622_v45 = vsub.s32 0, %v621_v44  ;;  %v630_v46 = vsub.s32 2, %v621_v44 }
  0x54   :  { %543 = vmatpush1.bf16.msra.mxu0 %v1217_v48  ;;  %584 = vmatpush1.bf16.msra.mxu1 %v1220_v49  ;;  %v626_v48 = vsub.s32 1, %v621_v44  ;;  %v634_v49 = vsub.s32 3, %v621_v44 }
  0x55   :  { %544 = vmatprep.subr.bf16.mxu0 %v1225_v50  ;;  %585 = vmatprep.subr.bf16.mxu1 %v1228_v51  ;;  %v623_v50 = vrot.slane %v618_v47, %v622_v45  ;;  %v631_v51 = vrot.slane %v618_v47, %v630_v46 }
  0x58   :  { %545 = vmatpush1.bf16.msra.mxu0 %v1223_v52  ;;  %586 = vmatpush1.bf16.msra.mxu1 %v1226_v53 }
  0x59   :  { %546 = vmatprep.subr.bf16.mxu0 %v1231_v54  ;;  %587 = vmatprep.subr.bf16.mxu1 %v1234_v55 }
  0x5c   :  { %547 = vmatpush1.bf16.msra.mxu0 %v1229_v56  ;;  %588 = vmatpush1.bf16.msra.mxu1 %v1232_v57  ;;  %v627_v56 = vrot.slane %v618_v47, %v626_v48  ;;  %v635_v57 = vrot.slane %v618_v47, %v634_v49 }
  0x5d   :  { %548 = vmatprep.subr.bf16.mxu0 %v1237_v58  ;;  %589 = vmatprep.subr.bf16.mxu1 %v1240_v59 }
  0x60   :  { %549 = vmatpush1.bf16.msra.mxu0 %v1235_v60  ;;  %590 = vmatpush1.bf16.msra.mxu1 %v1238_v61 }
  0x61   :  { %550 = vmatprep.subr.bf16.mxu0 %v1243_v62  ;;  %591 = vmatprep.subr.bf16.mxu1 %v1246_v63 }
  0x64   :  { %551 = vmatpush1.bf16.msra.mxu0 %v1241_v0  ;;  %592 = vmatpush1.bf16.msra.mxu1 %v1244_v1 }
  0x65   :  { %1099 = vmatprep.subr.bf16.mxu0 %v1247_v3  ;;  %1121 = vmatprep.subr.bf16.mxu1 %v1248_v4 }
  0x67   :  { %569 = vmatmul.mubr.bf16.vlgmr.msra.gmra.mxu0 %v68_v2  ;;  %610 = vmatmul.mubr.bf16.vlgmr.msra.gmra.mxu1 %v68_v2 }
  0x68   :  { %1100 = vmatpush3.bf16.msra.mxu0 %v1249_v5  ;;  %1122 = vmatpush3.bf16.msra.mxu1 %v1250_v6 }
  0x69   :  { %1101 = vmatprep.subr.bf16.mxu0 %v1251_v7  ;;  %1123 = vmatprep.subr.bf16.mxu1 %v1252_v8 }
  0x6c   :  { %1102 = vmatpush3.bf16.msra.mxu0 %v1253_v9  ;;  %1124 = vmatpush3.bf16.msra.mxu1 %v1254_v10 }
  0x6d   :  { %1103 = vmatprep.subr.bf16.mxu0 %v1255_v11  ;;  %1125 = vmatprep.subr.bf16.mxu1 %v1256_v12 }
  0x70   :  { %1104 = vmatpush3.bf16.msra.mxu0 %v1257_v13  ;;  %1126 = vmatpush3.bf16.msra.mxu1 %v1258_v14 }
  0x71   :  { %1105 = vmatprep.subr.bf16.mxu0 %v1259_v15  ;;  %1127 = vmatprep.subr.bf16.mxu1 %v1260_v16  ;;  %v1066_v16 = vld [vmem:[%s1425_s6] ss:$0 sm:$0xff] }
  0x74   :  { %1106 = vmatpush3.bf16.msra.mxu0 %v1261_v17  ;;  %1128 = vmatpush3.bf16.msra.mxu1 %v1262_v18 }
  0x75   :  { %1107 = vmatprep.subr.bf16.mxu0 %v1263_v19  ;;  %1129 = vmatprep.subr.bf16.mxu1 %v1264_v20 }
  0x78   :  { %1108 = vmatpush3.bf16.msra.mxu0 %v1265_v21  ;;  %1130 = vmatpush3.bf16.msra.mxu1 %v1266_v22 }
  0x79   :  { %1109 = vmatprep.subr.bf16.mxu0 %v1267_v23  ;;  %1131 = vmatprep.subr.bf16.mxu1 %v1268_v24 }
  0x7c   :  { %1110 = vmatpush3.bf16.msra.mxu0 %v1269_v25  ;;  %1132 = vmatpush3.bf16.msra.mxu1 %v1270_v26 }
  0x7d   :  { %1111 = vmatprep.subr.bf16.mxu0 %v1271_v27  ;;  %1133 = vmatprep.subr.bf16.mxu1 %v1272_v28 }
  0x80   :  { %1112 = vmatpush3.bf16.msra.mxu0 %v1273_v29  ;;  %1134 = vmatpush3.bf16.msra.mxu1 %v1274_v30 }
  0x81   :  { %1113 = vmatprep.subr.bf16.mxu0 %v1275_v31  ;;  %1135 = vmatprep.subr.bf16.mxu1 %v1276_v32 }
  0x84   :  { %1114 = vmatpush3.bf16.msra.mxu0 %v1277_v33  ;;  %1136 = vmatpush3.bf16.msra.mxu1 %v1278_v34 }
 0x107   :  { %v328_v35 = vpop.f32.mrf.mxu0  ;;  %v369_v36 = vpop.f32.mrf.mxu1 }
 0x109   :  { %v330_v37 = vpop.f32.mrf.mxu0  ;;  %v371_v38 = vpop.f32.mrf.mxu1 }
 0x10b   :  { %v332_v39 = vpop.f32.mrf.mxu0  ;;  %v373_v40 = vpop.f32.mrf.mxu1 }
 0x10d   :  { %v333_v41 = vpop.f32.mrf.mxu0  ;;  %v374_v42 = vpop.f32.mrf.mxu1 }
 0x127   :  { %v570_v52 = vpop.f32.mrf.mxu0  ;;  %v611_v53 = vpop.f32.mrf.mxu1 }
 0x128   :  { %v571_v54 = vadd.f32 %v570_v52, %v328_v35  ;;  %v612_v55 = vadd.f32 %v611_v53, %v369_v36 }
 0x129   :  { %v572_v58 = vpop.f32.mrf.mxu0  ;;  %v613_v59 = vpop.f32.mrf.mxu1 }
 0x12a   :  { %v640_v60 = vadd.f32 %v623_v50, %v571_v54  ;;  %v642_v61 = vadd.f32 %v631_v51, %v612_v55  ;;  %v573_v62 = vadd.f32 %v572_v58, %v330_v37  ;;  %v614_v63 = vadd.f32 %v613_v59, %v371_v38 }
 0x12b   :  { %v574_v0 = vpop.f32.mrf.mxu0  ;;  %v615_v1 = vpop.f32.mrf.mxu1 }
 0x12c   :  { %v641_v2 = vadd.f32 %v627_v56, %v573_v62  ;;  %v643_v3 = vadd.f32 %v635_v57, %v614_v63  ;;  %v644_v4 = vmax.f32 %v640_v60, 0.0  ;;  %v646_v5 = vmax.f32 %v642_v61, 0.0 }
 0x12d   :  { %v575_v6 = vpop.f32.mrf.mxu0  ;;  %v616_v7 = vpop.f32.mrf.mxu1 }
 0x12e   :  { %v645_v8 = vmax.f32 %v641_v2, 0.0  ;;  %v647_v9 = vmax.f32 %v643_v3, 0.0  ;;  %v648_v12 = vpack.c.bf16 %v644_v4, %v644_v4  ;;  %v650_v13 = vpack.c.bf16 %v646_v5, %v646_v5 }
 0x130   :  { %v649_v10 = vpack.c.bf16 %v645_v8, %v645_v8  ;;  %v651_v11 = vpack.c.bf16 %v647_v9, %v647_v9 }
 0x132   :  { %947 = vmatprep.mubr.bf16.mxu0 %v649_v10  ;;  %987 = vmatprep.mubr.bf16.mxu1 %v651_v11 }
 0x133   :  { %948 = vmatmul.mubr.bf16.vlgmr.msra.gmra.mxu0 %v648_v12  ;;  %988 = vmatmul.mubr.bf16.vlgmr.msra.gmra.mxu1 %v650_v13 }
 0x1f3   :  { %v1115_v14 = vpop.f32.mrf.mxu0  ;;  %v1137_v15 = vpop.f32.mrf.mxu1 }
 0x1f5   :  { %v1116_v17 = vpop.f32.mrf.mxu0  ;;  %v1138_v18 = vpop.f32.mrf.mxu1 }
 0x1f6   :  { %v1117_v19 = vadd.f32 %v1116_v17, %v1115_v14  ;;  %v1139_v23 = vadd.f32 %v1138_v18, %v1137_v15 }
 0x1f7   :  { %v1118_v20 = vpop.f32.mrf.mxu0  ;;  %v1140_v21 = vpop.f32.mrf.mxu1 }
 0x1f8   :  { %v950_v22 = vadd.f32 %v1117_v19, %v1066_v16 }
 0x1f9   :  { %v1119_v24 = vpop.f32.mrf.mxu0  ;;  %v1141_v25 = vpop.f32.mrf.mxu1 }
 0x1fa   :  { %v990_v26 = vadd.f32 %v1139_v23, %v950_v22 }
 0x1fc   :  { %995 = vst [vmem:[%s1426_s7] sm:$0xff] %v990_v26 }
 0x1fd   :  { %1000 = vsyncpa [#allocation3], 1 }
 0x1fe   :  { %1001 = vsyncpa [#allocation5], 1 }

</bundles_post_ra>
